<compile_context>
chip_gen: v7x
topology: tpu7x:2x2x1
jax: 0.10.0
libtpu: 0.0.40
codegen_flags: <defaults>
</compile_context>

<pallas_src>
import functools

import jax
import jax.numpy as jnp
from jax.experimental import pallas as pl
from jax.experimental.pallas import tpu as pltpu


def _round_up(x, m):
    return (x + m - 1) // m * m


def _disc_block_kernel(a_ref, w_ref, gamma_ref, beta_ref, o_ref,
                       sum_ref, sumsq_ref, *, inv_m, eps, slope):
    """Two-phase fused conv-matmul + BatchNorm(train) + LeakyReLU.

    a_ref:     (TM, Kp)  bf16 im2col tile
    w_ref:     (Kp, Cp)  bf16 reshaped conv weight (resident)
    gamma_ref: (1, Cp)   f32 BN weight
    beta_ref:  (1, Cp)   f32 BN bias
    o_ref:     (TM, Cp)  f32 output tile
    sum_ref / sumsq_ref: (1, Cp) f32 scratch, persist across the grid.
    """
    phase = pl.program_id(0)
    m_idx = pl.program_id(1)

    # Conv as matmul on the MXU: bf16 inputs, f32 accumulation, DEFAULT
    # precision (no HIGHEST multi-pass decomposition).
    y = jnp.dot(a_ref[...], w_ref[...], preferred_element_type=jnp.float32)

    @pl.when(phase == 0)
    def _stats():
        @pl.when(m_idx == 0)
        def _init():
            sum_ref[...] = jnp.zeros_like(sum_ref)
            sumsq_ref[...] = jnp.zeros_like(sumsq_ref)
        # Zero-padded rows of A produce y == 0 exactly, so they contribute
        # nothing to either sum; dividing by the *true* M keeps stats unbiased.
        sum_ref[...] += jnp.sum(y, axis=0, keepdims=True)
        sumsq_ref[...] += jnp.sum(y * y, axis=0, keepdims=True)

    @pl.when(phase == 1)
    def _apply():
        # Fold BN into one per-channel scale/shift (cheap (1, Cp) vector ops;
        # rsqrt goes to the EUP slot), then a single FMA pass over the tile.
        mean = sum_ref[...] * inv_m
        var = jnp.maximum(sumsq_ref[...] * inv_m - mean * mean, 0.0)
        scale = gamma_ref[...] * jax.lax.rsqrt(var + eps)
        shift = beta_ref[...] - mean * scale
        z = y * scale + shift
        o_ref[...] = jnp.where(z >= 0.0, z, slope * z)


def discriminator_block(x, weight, bias, gamma, beta, *, stride, tm=512):
    """Forward pass of SRGAN DiscriminatorBlock.

    x: (N, Cin, H, W) f32; weight: (Cout, Cin, 3, 3); bias/gamma/beta: (Cout,)
    Returns (N, Cout, Ho, Wo) f32 (NCHW, matching the PyTorch module).
    """
    N, Cin, H, W = x.shape
    Cout = weight.shape[0]
    Ho = (H + 2 - 3) // stride + 1
    Wo = (W + 2 - 3) // stride + 1
    M = N * Ho * Wo
    K = Cin * 9

    # Conv bias cancels exactly through training-mode BatchNorm -> skip it.
    del bias

    # --- glue: im2col (zero pad=1, kernel=3, given stride), NHWC patch order
    # (cin, kh, kw) matching weight.reshape(Cout, Cin*9).
    # TODO(synk): build A tiles inside the kernel from NHWC x blocks to avoid
    # this 9x-inflated HBM round-trip at production SRGAN sizes.
    xp = jnp.pad(x, ((0, 0), (0, 0), (1, 1), (1, 1)))
    cols = []
    for kh in range(3):
        for kw in range(3):
            cols.append(xp[:, :,
                           kh:kh + (Ho - 1) * stride + 1:stride,
                           kw:kw + (Wo - 1) * stride + 1:stride])
    patches = jnp.stack(cols, axis=0).transpose(1, 3, 4, 2, 0)  # (N,Ho,Wo,Cin,9)
    A = patches.reshape(M, K)

    # --- pad to MXU / lane friendly shapes ---
    Kp = _round_up(K, 128)
    Cp = _round_up(Cout, 128)
    TM = min(tm, _round_up(M, 8))          # M tile (rows), multiple of 8
    Mp = _round_up(M, TM)
    nmt = Mp // TM

    A = jnp.pad(A, ((0, Mp - M), (0, Kp - K))).astype(jnp.bfloat16)
    Wm = jnp.pad(weight.reshape(Cout, K).T.astype(jnp.float32),
                 ((0, Kp - K), (0, Cp - Cout))).astype(jnp.bfloat16)
    g = jnp.pad(gamma.reshape(1, Cout).astype(jnp.float32),
                ((0, 0), (0, Cp - Cout)), constant_values=1.0)
    b = jnp.pad(beta.reshape(1, Cout).astype(jnp.float32),
                ((0, 0), (0, Cp - Cout)))

    kernel_fn = functools.partial(_disc_block_kernel,
                                  inv_m=1.0 / M, eps=1e-5, slope=0.2)

    out_slab = pl.pallas_call(
        kernel_fn,
        out_shape=jax.ShapeDtypeStruct((Mp, Cp), jnp.float32),
        grid_spec=pltpu.PrefetchScalarGridSpec(
            num_scalar_prefetch=0,
            grid=(2, nmt),                       # (phase, m-tile)
            in_specs=[
                pl.BlockSpec((TM, Kp), lambda p, m: (m, 0)),   # A tiles
                pl.BlockSpec((Kp, Cp), lambda p, m: (0, 0)),   # W resident
                pl.BlockSpec((1, Cp), lambda p, m: (0, 0)),    # gamma
                pl.BlockSpec((1, Cp), lambda p, m: (0, 0)),    # beta
            ],
            # Phase 0 never writes the output; pinning its block index to 0
            # means writebacks only happen during phase 1 (no garbage flush).
            out_specs=pl.BlockSpec((TM, Cp), lambda p, m: (m * p, 0)),
            scratch_shapes=[pltpu.VMEM((1, Cp), jnp.float32),   # sum
                            pltpu.VMEM((1, Cp), jnp.float32)],  # sum of squares
        ),
        compiler_params=pltpu.CompilerParams(
            # Both axes must stay "arbitrary": phase order matters, and the M
            # axis carries the shared stats scratch (megacore-splitting it
            # would give each core partial statistics).
            dimension_semantics=("arbitrary", "arbitrary"),
            vmem_limit_bytes=48 * 1024 * 1024,
        ),
    )(A, Wm, g, b)

    # Slice off padding. (Production chaining should keep this (M, Cout)/NHWC
    # slab and skip the NCHW transpose; we return NCHW to match the module.)
    out = out_slab[:M, :Cout].reshape(N, Ho, Wo, Cout)
    return out.transpose(0, 3, 1, 2)


def _reference(x, weight, bias, gamma, beta, *, stride, conv_dtype=jnp.float32):
    """Plain-JAX reference of the PyTorch forward (training-mode BN).

    conv_dtype=bf16 mirrors the kernel's MXU numerics for a tight comparison.
    """
    y = jax.lax.conv_general_dilated(
        x.astype(conv_dtype), weight.astype(conv_dtype),
        window_strides=(stride, stride), padding=((1, 1), (1, 1)),
        dimension_numbers=("NCHW", "OIHW", "NCHW"),
        preferred_element_type=jnp.float32,
    ).astype(jnp.float32) + bias[None, :, None, None]
    mean = jnp.mean(y, axis=(0, 2, 3), keepdims=True)
    var = jnp.mean(jnp.square(y - mean), axis=(0, 2, 3), keepdims=True)
    z = (gamma[None, :, None, None] * (y - mean) * jax.lax.rsqrt(var + 1e-5)
         + beta[None, :, None, None])
    return jnp.where(z >= 0.0, z, 0.2 * z)


if __name__ == "__main__":
    key = jax.random.PRNGKey(0)

    # (N, Cin, H, W, Cout, stride, tm)   -- small, deterministic configs that
    # exercise: stride-2, multi-tile accumulation, and M / Cout padding.
    configs = [
        (2, 4, 16, 16, 8, 2, 512),    # single M tile
        (2, 4, 16, 16, 16, 1, 128),   # M = 512 -> 4 M tiles (tiled stats)
        (1, 3, 10, 10, 5, 1, 512),    # M = 100 (row pad), Cout = 5 (lane pad)
    ]

    for cfg_i, (N, Cin, H, W, Cout, stride, tm) in enumerate(configs):
        key, kx, kw, kb, kg, kbt = jax.random.split(key, 6)
        x = jax.random.normal(kx, (N, Cin, H, W), dtype=jnp.float32)
        weight = 0.1 * jax.random.normal(kw, (Cout, Cin, 3, 3), dtype=jnp.float32)
        bias = 0.1 * jax.random.normal(kb, (Cout,), dtype=jnp.float32)
        gamma = 1.0 + 0.1 * jax.random.normal(kg, (Cout,), dtype=jnp.float32)
        beta = 0.1 * jax.random.normal(kbt, (Cout,), dtype=jnp.float32)

        out = jax.block_until_ready(
            discriminator_block(x, weight, bias, gamma, beta,
                                stride=stride, tm=tm))

        # Tight check vs a reference that mirrors the kernel's bf16 MXU inputs.
        ref_bf16 = jax.block_until_ready(
            _reference(x, weight, bias, gamma, beta, stride=stride,
                       conv_dtype=jnp.bfloat16))
        assert out.shape == ref_bf16.shape, (cfg_i, out.shape, ref_bf16.shape)
        err = float(jnp.max(jnp.abs(out - ref_bf16)))
        assert jnp.allclose(out, ref_bf16, atol=5e-3, rtol=5e-3), (cfg_i, err)

        # Loose sanity check vs the exact f32 module semantics (bf16 conv
        # quantization is the only difference).
        ref_f32 = jax.block_until_ready(
            _reference(x, weight, bias, gamma, beta, stride=stride,
                       conv_dtype=jnp.float32))
        err32 = float(jnp.max(jnp.abs(out - ref_f32)))
        assert jnp.allclose(out, ref_f32, atol=8e-2, rtol=8e-2), (cfg_i, err32)

    print("KERNEL_OK")
</pallas_src>

<mosaic_0001>
module attributes {stable_mosaic.version = 11 : i64} {
  func.func @_disc_block_kernel(%arg0: i32, %arg1: i32, %arg2: memref<128x128xbf16, #tpu.memory_space<vmem>>, %arg3: memref<128x128xbf16, #tpu.memory_space<vmem>>, %arg4: memref<1x128xf32, #tpu.memory_space<vmem>>, %arg5: memref<1x128xf32, #tpu.memory_space<vmem>>, %arg6: memref<128x128xf32, #tpu.memory_space<vmem>>, %arg7: memref<1x128xf32, #tpu.memory_space<vmem>>, %arg8: memref<1x128xf32, #tpu.memory_space<vmem>>) attributes {dimension_semantics = [#tpu.dimension_semantics<arbitrary>, #tpu.dimension_semantics<arbitrary>], iteration_bounds = array<i64: 2, 1>, scalar_prefetch = 0 : i64, scratch_operands = 2 : i64, tpu.core_type = #tpu.core_type<tc>, window_params = [{transform_indices = @transform_0, window_bounds = array<i64: 128, 128>}, {pipeline_mode = #tpu.pipeline_mode<synchronous>, transform_indices = @transform_1, window_bounds = array<i64: 128, 128>}, {pipeline_mode = #tpu.pipeline_mode<synchronous>, transform_indices = @transform_2, window_bounds = array<i64: 1, 128>}, {pipeline_mode = #tpu.pipeline_mode<synchronous>, transform_indices = @transform_3, window_bounds = array<i64: 1, 128>}, {transform_indices = @transform_4, window_bounds = array<i64: 128, 128>}]} {
    %c0 = arith.constant 0 : index
    %c0_0 = arith.constant 0 : index
    %0 = vector.load %arg2[%c0, %c0_0] : memref<128x128xbf16, #tpu.memory_space<vmem>>, vector<128x128xbf16>
    %c0_1 = arith.constant 0 : index
    %c0_2 = arith.constant 0 : index
    %1 = vector.load %arg3[%c0_1, %c0_2] : memref<128x128xbf16, #tpu.memory_space<vmem>>, vector<128x128xbf16>
    %cst = arith.constant dense<0.000000e+00> : vector<128x128xf32>
    %2 = tpu.matmul %0, %1, %cst {dimension_numbers = #tpu.dot_dimension_numbers<[1], [0], [0], [1], [0, 0, 1, 1], [], []>} : vector<128x128xbf16>, vector<128x128xbf16>, vector<128x128xf32> -> vector<128x128xf32>
    %c0_i32 = arith.constant 0 : i32
    %3 = arith.cmpi eq, %arg0, %c0_i32 : i32
    %4 = arith.extui %3 : i1 to i32
    %c0_i32_3 = arith.constant 0 : i32
    %5 = arith.cmpi ne, %4, %c0_i32_3 : i32
    scf.if %5 {
      %c0_i32_5 = arith.constant 0 : i32
      %9 = arith.cmpi eq, %arg1, %c0_i32_5 : i32
      %10 = arith.extui %9 : i1 to i32
      %c0_i32_6 = arith.constant 0 : i32
      %11 = arith.cmpi ne, %10, %c0_i32_6 : i32
      scf.if %11 {
        %cst_17 = arith.constant 0.000000e+00 : f32
        %23 = vector.broadcast %cst_17 : f32 to vector<1x128xf32>
        %c0_18 = arith.constant 0 : index
        %c0_19 = arith.constant 0 : index
        %24 = vector.load %arg7[%c0_18, %c0_19] : memref<1x128xf32, #tpu.memory_space<vmem>>, vector<1x128xf32>
        tpu.vector_store %arg7[%c0_18, %c0_19], %23 {strides = array<i32>} : memref<1x128xf32, #tpu.memory_space<vmem>>, vector<1x128xf32>,
        %cst_20 = arith.constant 0.000000e+00 : f32
        %25 = vector.broadcast %cst_20 : f32 to vector<1x128xf32>
        %c0_21 = arith.constant 0 : index
        %c0_22 = arith.constant 0 : index
        %26 = vector.load %arg8[%c0_21, %c0_22] : memref<1x128xf32, #tpu.memory_space<vmem>>, vector<1x128xf32>
        tpu.vector_store %arg8[%c0_21, %c0_22], %25 {strides = array<i32>} : memref<1x128xf32, #tpu.memory_space<vmem>>, vector<1x128xf32>,
      } else {
      }
      %c0_7 = arith.constant 0 : index
      %c0_8 = arith.constant 0 : index
      %12 = vector.load %arg7[%c0_7, %c0_8] : memref<1x128xf32, #tpu.memory_space<vmem>>, vector<1x128xf32>
      %cst_9 = arith.constant dense<0.000000e+00> : vector<128xf32>
      %13 = vector.multi_reduction <add>, %2, %cst_9 [0] : vector<128x128xf32> to vector<128xf32>
      %14 = vector.shape_cast %13 : vector<128xf32> to vector<1x128xf32>
      %15 = arith.addf %12, %14 : vector<1x128xf32>
      %c0_10 = arith.constant 0 : index
      %c0_11 = arith.constant 0 : index
      %16 = vector.load %arg7[%c0_10, %c0_11] : memref<1x128xf32, #tpu.memory_space<vmem>>, vector<1x128xf32>
      tpu.vector_store %arg7[%c0_10, %c0_11], %15 {strides = array<i32>} : memref<1x128xf32, #tpu.memory_space<vmem>>, vector<1x128xf32>,
      %c0_12 = arith.constant 0 : index
      %c0_13 = arith.constant 0 : index
      %17 = vector.load %arg8[%c0_12, %c0_13] : memref<1x128xf32, #tpu.memory_space<vmem>>, vector<1x128xf32>
      %18 = arith.mulf %2, %2 : vector<128x128xf32>
      %cst_14 = arith.constant dense<0.000000e+00> : vector<128xf32>
      %19 = vector.multi_reduction <add>, %18, %cst_14 [0] : vector<128x128xf32> to vector<128xf32>
      %20 = vector.shape_cast %19 : vector<128xf32> to vector<1x128xf32>
      %21 = arith.addf %17, %20 : vector<1x128xf32>
      %c0_15 = arith.constant 0 : index
      %c0_16 = arith.constant 0 : index
      %22 = vector.load %arg8[%c0_15, %c0_16] : memref<1x128xf32, #tpu.memory_space<vmem>>, vector<1x128xf32>
      tpu.vector_store %arg8[%c0_15, %c0_16], %21 {strides = array<i32>} : memref<1x128xf32, #tpu.memory_space<vmem>>, vector<1x128xf32>,
    } else {
    }
    %c1_i32 = arith.constant 1 : i32
    %6 = arith.cmpi eq, %arg0, %c1_i32 : i32
    %7 = arith.extui %6 : i1 to i32
    %c0_i32_4 = arith.constant 0 : i32
    %8 = arith.cmpi ne, %7, %c0_i32_4 : i32
    scf.if %8 {
      %c0_5 = arith.constant 0 : index
      %c0_6 = arith.constant 0 : index
      %9 = vector.load %arg7[%c0_5, %c0_6] : memref<1x128xf32, #tpu.memory_space<vmem>>, vector<1x128xf32>
      %cst_7 = arith.constant 7.812500e-03 : f32
      %10 = vector.broadcast %cst_7 : f32 to vector<1x128xf32>
      %11 = arith.mulf %9, %10 : vector<1x128xf32>
      %c0_8 = arith.constant 0 : index
      %c0_9 = arith.constant 0 : index
      %12 = vector.load %arg8[%c0_8, %c0_9] : memref<1x128xf32, #tpu.memory_space<vmem>>, vector<1x128xf32>
      %cst_10 = arith.constant 7.812500e-03 : f32
      %13 = vector.broadcast %cst_10 : f32 to vector<1x128xf32>
      %14 = arith.mulf %12, %13 : vector<1x128xf32>
      %15 = arith.mulf %11, %11 : vector<1x128xf32>
      %16 = arith.subf %14, %15 : vector<1x128xf32>
      %cst_11 = arith.constant 0.000000e+00 : f32
      %17 = vector.broadcast %cst_11 : f32 to vector<1x128xf32>
      %18 = arith.maximumf %16, %17 : vector<1x128xf32>
      %c0_12 = arith.constant 0 : index
      %c0_13 = arith.constant 0 : index
      %19 = vector.load %arg4[%c0_12, %c0_13] : memref<1x128xf32, #tpu.memory_space<vmem>>, vector<1x128xf32>
      %cst_14 = arith.constant 9.99999974E-6 : f32
      %20 = vector.broadcast %cst_14 : f32 to vector<1x128xf32>
      %21 = arith.addf %18, %20 : vector<1x128xf32>
      %22 = math.rsqrt %21 : vector<1x128xf32>
      %23 = arith.mulf %19, %22 : vector<1x128xf32>
      %c0_15 = arith.constant 0 : index
      %c0_16 = arith.constant 0 : index
      %24 = vector.load %arg5[%c0_15, %c0_16] : memref<1x128xf32, #tpu.memory_space<vmem>>, vector<1x128xf32>
      %25 = arith.mulf %11, %23 : vector<1x128xf32>
      %26 = arith.subf %24, %25 : vector<1x128xf32>
      %27 = vector.broadcast %23 : vector<1x128xf32> to vector<128x128xf32>
      %28 = arith.mulf %2, %27 : vector<128x128xf32>
      %29 = vector.broadcast %26 : vector<1x128xf32> to vector<128x128xf32>
      %30 = arith.addf %28, %29 : vector<128x128xf32>
      %cst_17 = arith.constant 0.000000e+00 : f32
      %31 = vector.broadcast %cst_17 : f32 to vector<128x128xf32>
      %32 = arith.cmpf oge, %30, %31 : vector<128x128xf32>
      %cst_18 = arith.constant 2.000000e-01 : f32
      %33 = vector.broadcast %cst_18 : f32 to vector<128x128xf32>
      %34 = arith.mulf %33, %30 : vector<128x128xf32>
      %35 = arith.select %32, %30, %34 : vector<128x128xi1>, vector<128x128xf32>
      %c0_19 = arith.constant 0 : index
      %c0_20 = arith.constant 0 : index
      %36 = vector.load %arg6[%c0_19, %c0_20] : memref<128x128xf32, #tpu.memory_space<vmem>>, vector<128x128xf32>
      tpu.vector_store %arg6[%c0_19, %c0_20], %35 {strides = array<i32>} : memref<128x128xf32, #tpu.memory_space<vmem>>, vector<128x128xf32>,
    } else {
    }
    return
  }
  func.func @transform_0(%arg0: i32, %arg1: i32) -> (i32, i32) {
    %c0_i32 = arith.constant 0 : i32
    %c0_i32_0 = arith.constant 0 : i32
    return %arg1, %c0_i32 : i32, i32
  }
  func.func @transform_1(%arg0: i32, %arg1: i32) -> (i32, i32) {
    %c0_i32 = arith.constant 0 : i32
    %c0_i32_0 = arith.constant 0 : i32
    %c0_i32_1 = arith.constant 0 : i32
    return %c0_i32, %c0_i32_0 : i32, i32
  }
  func.func @transform_2(%arg0: i32, %arg1: i32) -> (i32, i32) {
    %c0_i32 = arith.constant 0 : i32
    %c0_i32_0 = arith.constant 0 : i32
    %c0_i32_1 = arith.constant 0 : i32
    return %c0_i32, %c0_i32_0 : i32, i32
  }
  func.func @transform_3(%arg0: i32, %arg1: i32) -> (i32, i32) {
    %c0_i32 = arith.constant 0 : i32
    %c0_i32_0 = arith.constant 0 : i32
    %c0_i32_1 = arith.constant 0 : i32
    return %c0_i32, %c0_i32_0 : i32, i32
  }
  func.func @transform_4(%arg0: i32, %arg1: i32) -> (i32, i32) {
    %0 = arith.muli %arg1, %arg0 : i32
    %c0_i32 = arith.constant 0 : i32
    %c0_i32_0 = arith.constant 0 : i32
    return %0, %c0_i32 : i32, i32
  }
}

</mosaic_0001>

<bundles_post_ra>
// kernel: tpu_custom_call.1
= control target key start
LH: loop header
LB: loop body
LE: loop exit
PB: predicated region body
PF: predicated region fallthrough
CT: control target
= control target key end

     0   :  { %9 = vsyncpa [#allocation5], 0  ;;  %s1354_s0 = inlined_call_operand.hbm [shape: bf16[128,128], index: 0, kind: input, shape index: {}]   ;;  %s1355_s1 = inlined_call_operand.hbm [shape: bf16[128,128], index: 1, kind: input, shape index: {}]   ;;  %s1356_s2 = inlined_call_operand.vmem [shape: f32[1,128], index: 2, kind: input, shape index: {}]   ;;  %s1357_s3 = inlined_call_operand.vmem [shape: f32[1,128], index: 3, kind: input, shape index: {}]   ;;  %s1358_s4 = inlined_call_operand.hbm [shape: f32[128,128], index: 4, kind: output, shape index: {}]  }
   0x1   :  { %10 = vsyncpa [#allocation8], 0 }
   0x2   :  { %11 = vsyncpa [#allocation6], 0 }
   0x3   :  { %13 = vsyncpa [#allocation6 + $0x1], 0  ;;  %s1079_s15 = smov 0   ;;  %s1081_s16 = smov 0  }
   0x4   :  { %s1083_s17 = smov 0  }
   0x5 LB: > { %s754_s18 = sadd.s32 4294967295, %s1044_s17   ;;  %s755_s19 = sadd.s32 4294967294, %s1044_s17   ;;  %s1044_s17 = sphi %s1083_s17, %s19_s17   ;;  %s1040_s16 = sphi %s1081_s16, %s1369_s16   ;;  %s1036_s15 = sphi %s1079_s15, %s1368_s15  }
   0x6   : > { %s31_s20 = sadd.s32 1, %s1040_s16  ;;  %p756_p0 = scmp.ge.s32.totalorder %s1044_s17, 1 }
   0x7   : > { %p33_p1 = scmp.ge.s32.totalorder %s31_s20, 2  ;;  %p153_p2 = scmp.lt.s32.totalorder %s1044_s17, 3 }
   0x8   : > { %p1101_p3 = scmp.eq.s32.totalorder %s754_s18, 0  ;;  %s1046_s23 = smov [#allocation4]  }
   0x9   : > { %s1371_s20 = smov (%p33_p1, %s31_s20), 0  ;;  %p1107_p4 = pnand %p756_p0, %p153_p2 }
   0xa   : > { %s1362_s21 = scalar_select %p1101_p3, 1, 0 }
   0xb   : > { %s1363_s22 = scalar_select %p1107_p4, 1, 0 }
   0xc   : > { %s168_s24 = sshll.u32 %s1046_s23, 4  ;;  %p860_p5 = pneg %p1107_p4  ;;  %s169_s24 = int_to_ptr.vmem [resolvable:$true] %s168_s24 }
   0xd   : > { %s1047_s26 = smov [#allocation7]   ;;  %s928_s30 = scalar_lea.hbm %s1354_s0, 1024 }
   0xe   : > { %p1115_p6 = pnand %p1101_p3, %p860_p5  ;;  %s181_s27 = sshll.u32 %s1047_s26, 4  ;;  %s1119_s27 = int_to_ptr.vmem [resolvable:$true] %s181_s27 }
   0xf   : > { %p929_p7 = scmp.ne.s32.totalorder %s1354_s0, %s928_s30  ;;  %p935_p11 = scmp.lt.u32.totalorder %s928_s30, %s1354_s0 }
  0x10   : > { %p930_p8 = pneg %p1115_p6 }
  0x12   : > { %p931_p9 = pnand %p930_p8, %p929_p7 }
  0x14   : > { %p932_p10 = pneg %p931_p9 }
  0x16   : > { %p937_p12 = pnand %p935_p11, %p932_p10 }
  0x18   : > { %940 = shalt.err (!%p937_p12)
}
  0x19   : > { %s941_s9 = scalar_lea.vmem %s169_s24, 1024  ;;  %p949_p2 = scmp.lt.s32.totalorder %s169_s24, %s169_s24 }
  0x1a   : > { %p942_p13 = scmp.ne.s32.totalorder %s169_s24, %s941_s9  ;;  %p950_p5 = scmp.lt.s32.totalorder %s941_s9, %s941_s9 }
  0x1c   : > { %p944_p0 = pnand %p942_p13, %p930_p8  ;;  %p951_p3 = por %p950_p5, %p949_p2 }
  0x1e   : > { %p945_p1 = pneg %p944_p0 }
  0x20   : > { %p952_p4 = pnand %p951_p3, %p945_p1 }
  0x22   : > { %955 = shalt.err (!%p952_p4)
}
  0x23   : > { %s1048_s10 = smov 64   ;;  %s1049_s11 = smov 4  }
  0x24   : > { %863 = dma.hbm_to_vmem [thread:$0]  (!%p1115_p6), %s1354_s0, 1024, %s169_s24, [#allocation5], %s1048_s10, %s1048_s10, %s1049_s11  }
  0x25   : > { %s956_s26 = scalar_lea.hbm %s1355_s1, 1024 }
  0x26   : > { %p957_p7 = scmp.ne.s32.totalorder %s1355_s1, %s956_s26  ;;  %p963_p9 = scmp.lt.u32.totalorder %s956_s26, %s1355_s1 }
  0x28   : > { %p959_p3 = pnand %p957_p7, %p930_p8 }
  0x2a   : > { %p960_p4 = pneg %p959_p3 }
  0x2c   : > { %p965_p10 = pnand %p963_p9, %p960_p4 }
  0x2e   : > { %968 = shalt.err (!%p965_p10)
}
  0x2f   : > { %s969_s24 = scalar_lea.vmem %s1119_s27, 1024  ;;  %p977_p0 = scmp.lt.s32.totalorder %s1119_s27, %s1119_s27 }
  0x30   : > { %p970_p11 = scmp.ne.s32.totalorder %s1119_s27, %s969_s24  ;;  %p978_p1 = scmp.lt.s32.totalorder %s969_s24, %s969_s24 }
  0x32   : > { %p972_p12 = pnand %p970_p11, %p930_p8  ;;  %p979_p2 = por %p978_p1, %p977_p0 }
  0x34   : > { %p973_p13 = pneg %p972_p12 }
  0x36   : > { %p980_p5 = pnand %p979_p2, %p973_p13 }
  0x38   : > { %983 = shalt.err (!%p980_p5)
}
  0x39   : > { %866 = dma.hbm_to_vmem [thread:$0]  (!%p1115_p6), %s1355_s1, 1024, %s1119_s27, [#allocation8], %s1048_s10, %s1048_s10, %s1049_s11  }
  0x3a   : > { %p1365_p7 = scmp.ne.s32.totalorder %s1363_s22, 0 }
  0x3b   : > { %p1366_p3 = scmp.ne.s32.totalorder (!%p1365_p7), %s1362_s21, 0 }
  0x3c   : > { %203 = sbr.rel (%p1365_p7) target bundleno = 444 (0x1bc), region = 36 }
  0x43   : > { %1023 = dma.done.wait (%p1366_p3), [#allocation5], 1024  }
  0x44   : > { %1025 = vsyncadd (%p1366_p3), [#allocation5], 4294966272 }
  0x45   : > { %1027 = dma.done.wait (%p1366_p3), [#allocation8], 1024  }
  0x46   : > { %1029 = vsyncadd (%p1366_p3), [#allocation8], 4294966272  ;;  %v910_v0 = vld [vmem:[#allocation7] sm:$0xff]   ;;  %v911_v1 = vld [vmem:[#allocation7 + $0x8] sm:$0xff]   ;;  %p778_p6 = scmp.ne.s32.totalorder %s1036_s15, 0 }
  0x47   : > { %800 = vmatprep.subr.bf16.mxu0 %v910_v0  ;;  %832 = vmatprep.subr.bf16.mxu1 %v910_v0  ;;  %v912_v2 = vld [vmem:[#allocation7 + $0x10] sm:$0xff]   ;;  %v913_v3 = vld [vmem:[#allocation7 + $0x18] sm:$0xff]   ;;  %v918_v4 = vld [vmem:[#allocation4] sm:$0xff]   ;;  %v1050_v33 = vmov (!%p778_p6), 0.0  }
  0x48   : > { %801 = vmatpush3.bf16.msra.mxu0 %v910_v0  ;;  %840 = vmatpush3.bf16.msra.mxu1 %v910_v0  ;;  %v919_v5 = vld [vmem:[#allocation4 + $0x20] sm:$0xff]   ;;  %v915_v7 = vld [vmem:[#allocation7 + $0x28] sm:$0xff]   ;;  %v916_v8 = vld [vmem:[#allocation7 + $0x30] sm:$0xff]   ;;  %465 = vst [vmem:[#allocation2] sm:$0x1] (!%p778_p6), %v1050_v33 }
  0x49   : > { %802 = vmatprep.subr.bf16.mxu0 %v911_v1  ;;  %833 = vmatprep.subr.bf16.mxu1 %v911_v1  ;;  %v914_v6 = vld [vmem:[#allocation7 + $0x20] sm:$0xff]   ;;  %v917_v9 = vld [vmem:[#allocation7 + $0x38] sm:$0xff]   ;;  %v920_v10 = vld [vmem:[#allocation4 + $0x8] sm:$0xff]   ;;  %466 = vst [vmem:[#allocation3] sm:$0x1] (!%p778_p6), %v1050_v33 }
  0x4a   : > { %816 = vmatprep.mubr.bf16.mxu0 %v918_v4  ;;  %824 = vmatprep.mubr.bf16.mxu1 %v919_v5  ;;  %v921_v11 = vld [vmem:[#allocation4 + $0x28] sm:$0xff]   ;;  %v922_v12 = vld [vmem:[#allocation4 + $0x10] sm:$0xff]   ;;  %v924_v14 = vld [vmem:[#allocation4 + $0x18] sm:$0xff]  }
  0x4b   : > { %v923_v13 = vld [vmem:[#allocation4 + $0x30] sm:$0xff]   ;;  %v925_v15 = vld [vmem:[#allocation4 + $0x38] sm:$0xff]  }
  0x4c   : > { %803 = vmatpush3.bf16.msra.mxu0 %v911_v1  ;;  %841 = vmatpush3.bf16.msra.mxu1 %v911_v1 }
  0x4d   : > { %804 = vmatprep.subr.bf16.mxu0 %v912_v2  ;;  %834 = vmatprep.subr.bf16.mxu1 %v912_v2 }
  0x50   : > { %805 = vmatpush3.bf16.msra.mxu0 %v912_v2  ;;  %842 = vmatpush3.bf16.msra.mxu1 %v912_v2 }
  0x51   : > { %806 = vmatprep.subr.bf16.mxu0 %v913_v3  ;;  %835 = vmatprep.subr.bf16.mxu1 %v913_v3 }
  0x54   : > { %807 = vmatpush3.bf16.msra.mxu0 %v913_v3  ;;  %843 = vmatpush3.bf16.msra.mxu1 %v913_v3 }
  0x55   : > { %808 = vmatprep.subr.bf16.mxu0 %v914_v6  ;;  %836 = vmatprep.subr.bf16.mxu1 %v914_v6 }
  0x58   : > { %809 = vmatpush3.bf16.msra.mxu0 %v914_v6  ;;  %844 = vmatpush3.bf16.msra.mxu1 %v914_v6 }
  0x59   : > { %810 = vmatprep.subr.bf16.mxu0 %v915_v7  ;;  %837 = vmatprep.subr.bf16.mxu1 %v915_v7 }
  0x5c   : > { %811 = vmatpush3.bf16.msra.mxu0 %v915_v7  ;;  %845 = vmatpush3.bf16.msra.mxu1 %v915_v7 }
  0x5d   : > { %812 = vmatprep.subr.bf16.mxu0 %v916_v8  ;;  %838 = vmatprep.subr.bf16.mxu1 %v916_v8 }
  0x60   : > { %813 = vmatpush3.bf16.msra.mxu0 %v916_v8  ;;  %846 = vmatpush3.bf16.msra.mxu1 %v916_v8 }
  0x61   : > { %814 = vmatprep.subr.bf16.mxu0 %v917_v9  ;;  %839 = vmatprep.subr.bf16.mxu1 %v917_v9 }
  0x64   : > { %815 = vmatpush3.bf16.msra.mxu0 %v917_v9  ;;  %847 = vmatpush3.bf16.msra.mxu1 %v917_v9 }
  0x67   : > { %817 = vmatmul.mubr.bf16.vlgmr.msra.gmra.mrb[0].mxu0 %v920_v10  ;;  %825 = vmatmul.mubr.bf16.vlgmr.msra.gmra.mrb[0].mxu1 %v921_v11 }
  0x68   : > { %820 = vmatprep.mubr.bf16.mxu0 %v922_v12  ;;  %828 = vmatprep.mubr.bf16.mxu1 %v923_v13 }
  0x6f   : > { %821 = vmatmul.mubr.bf16.gmra.mrb[4].mxu0 %v924_v14  ;;  %829 = vmatmul.mubr.bf16.gmra.mrb[4].mxu1 %v925_v15 }
 0x13a   : > { %v1178_v16 = vpop.f32.mrb[0].mxu0  ;;  %v1180_v17 = vpop.f32.mrb[0].mxu1 }
 0x13b   : > { %v1182_v18 = vpop.f32.mrb[1].mxu0  ;;  %v1184_v19 = vpop.f32.mrb[1].mxu1  ;;  %v494_v37 = vmul.f32 (!%p778_p6), %v1178_v16, %v1178_v16  ;;  %v502_v60 = vmul.f32 (!%p778_p6), %v1180_v17, %v1180_v17 }
 0x13c   : > { %v1186_v20 = vpop.f32.mrb[2].mxu0  ;;  %v1188_v21 = vpop.f32.mrb[2].mxu1  ;;  %v492_v34 = vmul.f32 (!%p778_p6), %v1182_v18, %v1182_v18  ;;  %v500_v54 = vmul.f32 (!%p778_p6), %v1184_v19, %v1184_v19 }
 0x13d   : > { %v1190_v22 = vpop.f32.mrb[3].mxu0  ;;  %v1192_v23 = vpop.f32.mrb[3].mxu1  ;;  %v495_v39 = vmul.f32 (!%p778_p6), %v1186_v20, %v1186_v20  ;;  %v503_v63 = vmul.f32 (!%p778_p6), %v1188_v21, %v1188_v21 }
 0x13e   : > { %v468_v32 = vadd.f32 (!%p778_p6), %v1190_v22, %v1182_v18  ;;  %v493_v35 = vmul.f32 (!%p778_p6), %v1190_v22, %v1190_v22  ;;  %v501_v57 = vmul.f32 (!%p778_p6), %v1192_v23, %v1192_v23 }
 0x13f   : > { %460 = sbr.rel (%p778_p6) target bundleno = 365 (0x16d), region = 48 }
 0x140   : > { %v469_v36 = vadd.f32 (!%p778_p6), %v1178_v16, %v468_v32  ;;  %v508_v40 = vadd.f32 (!%p778_p6), %v493_v35, %v492_v34 }
 0x142   : > { %v1194_v24 = vpop.f32.mrb[4].mxu0  ;;  %v1196_v25 = vpop.f32.mrb[4].mxu1  ;;  %v470_v38 = vadd.f32 (!%p778_p6), %v1186_v20, %v469_v36  ;;  %v509_v43 = vadd.f32 (!%p778_p6), %v508_v40, %v494_v37 }
 0x143   : > { %v1198_v26 = vpop.f32.mrb[5].mxu0  ;;  %v1200_v27 = vpop.f32.mrb[5].mxu1  ;;  %v498_v48 = vmul.f32 (!%p778_p6), %v1194_v24, %v1194_v24  ;;  %v506_v8 = vmul.f32 (!%p778_p6), %v1196_v25, %v1196_v25 }
 0x144   : > { %v1202_v28 = vpop.f32.mrb[6].mxu0  ;;  %v1204_v29 = vpop.f32.mrb[6].mxu1  ;;  %v471_v41 = vadd.f32 (!%p778_p6), %v470_v38, %v1198_v26  ;;  %v496_v42 = vmul.f32 (!%p778_p6), %v1198_v26, %v1198_v26  ;;  %v510_v46 = vadd.f32 (!%p778_p6), %v509_v43, %v495_v39  ;;  %v504_v2 = vmul.f32 (!%p778_p6), %v1200_v27, %v1200_v27  ;;  %v467_v38 = vld [vmem:[#allocation2] sm:$0x1] (!%p778_p6) }
 0x145   : > { %v1206_v30 = vpop.f32.mrb[7].mxu0  ;;  %v1208_v31 = vpop.f32.mrb[7].mxu1  ;;  %v499_v51 = vmul.f32 (!%p778_p6), %v1202_v28, %v1202_v28  ;;  %v507_v11 = vmul.f32 (!%p778_p6), %v1204_v29, %v1204_v29 }
 0x146   : > { %v472_v44 = vadd.f32 %v471_v41, %v1206_v30  ;;  %v497_v45 = vmul.f32 %v1206_v30, %v1206_v30  ;;  %v511_v49 = vadd.f32 %v510_v46, %v496_v42  ;;  %v505_v5 = vmul.f32 %v1208_v31, %v1208_v31 }
 0x148   : > { %v473_v47 = vadd.f32 %v1194_v24, %v472_v44  ;;  %v512_v52 = vadd.f32 %v511_v49, %v497_v45  ;;  %v491_v44 = vld [vmem:[#allocation3] sm:$0x1] }
 0x14a   : > { %v474_v50 = vadd.f32 %v1202_v28, %v473_v47  ;;  %v513_v55 = vadd.f32 %v512_v52, %v498_v48 }
 0x14c   : > { %v475_v53 = vadd.f32 %v474_v50, %v1184_v19  ;;  %v514_v58 = vadd.f32 %v513_v55, %v499_v51 }
 0x14e   : > { %v476_v56 = vadd.f32 %v475_v53, %v1192_v23  ;;  %v515_v61 = vadd.f32 %v514_v58, %v500_v54 }
 0x150   : > { %v477_v59 = vadd.f32 %v1180_v17, %v476_v56  ;;  %v516_v0 = vadd.f32 %v515_v61, %v501_v57 }
 0x152   : > { %v478_v62 = vadd.f32 %v1188_v21, %v477_v59  ;;  %v517_v3 = vadd.f32 %v516_v0, %v502_v60 }
 0x154   : > { %v479_v1 = vadd.f32 %v478_v62, %v1200_v27  ;;  %v518_v6 = vadd.f32 %v517_v3, %v503_v63 }
 0x156   : > { %v480_v4 = vadd.f32 %v479_v1, %v1208_v31  ;;  %v519_v9 = vadd.f32 %v518_v6, %v504_v2 }
 0x158   : > { %v481_v7 = vadd.f32 %v1196_v25, %v480_v4  ;;  %v520_v12 = vadd.f32 %v519_v9, %v505_v5 }
 0x15a   : > { %v482_v10 = vadd.f32 %v1204_v29, %v481_v7  ;;  %v521_v14 = vadd.f32 %v520_v12, %v506_v8 }
 0x15c   : > { %v483_v13 = vrot.slane %v482_v10, 4  ;;  %v522_v32 = vadd.f32 %v521_v14, %v507_v11 }
 0x15e   : > { %v484_v15 = vadd.f32 %v483_v13, %v482_v10  ;;  %v523_v34 = vrot.slane %v522_v32, 4 }
 0x160   : > { %v485_v33 = vrot.slane %v484_v15, 2  ;;  %v524_v36 = vadd.f32 %v523_v34, %v522_v32 }
 0x162   : > { %v486_v35 = vadd.f32 %v485_v33, %v484_v15  ;;  %v525_v39 = vrot.slane %v524_v36, 2 }
 0x164   : > { %v487_v37 = vrot.slane %v486_v35, 1  ;;  %v526_v41 = vadd.f32 %v525_v39, %v524_v36 }
 0x166   : > { %v488_v40 = vadd.f32 %v487_v37, %v486_v35  ;;  %v527_v43 = vrot.slane %v526_v41, 1 }
 0x168   : > { %v489_v42 = vadd.f32 %v488_v40, %v467_v38  ;;  %v528_v45 = vadd.f32 %v527_v43, %v526_v41 }
 0x16a   : > { %490 = vst [vmem:[#allocation2] sm:$0x1] %v489_v42  ;;  %v529_v46 = vadd.f32 %v528_v45, %v491_v44 }
 0x16c   : > { %530 = vst [vmem:[#allocation3] sm:$0x1] %v529_v46 }
 0x16d PF: > { %p779_p8 = scmp.ne.s32.totalorder %s1036_s15, 1 }
 0x16e   : > { %v550_v55 = vlaneseq (!%p779_p8)  ;;  %v542_v57 = vld [vmem:[%s1356_s2] sm:$0x1] (!%p779_p8) }
 0x16f   : > { %534 = sbr.rel (%p779_p8) target bundleno = 420 (0x1a4), region = 56  ;;  %v546_v61 = vld [vmem:[%s1357_s3] sm:$0x1] (!%p779_p8) }
 0x170   : > { %v551_v56 = vshrl.u32 (!%p779_p8), %v550_v55, 7 }
 0x171   : > { %v535_v47 = vld [vmem:[#allocation2] sm:$0x1] (!%p779_p8) }
 0x172   : > { %v536_v49 = vmul.f32 (!%p779_p8), 0.0078125, %v535_v47  ;;  %v552_v58 = vsub.s32 (!%p779_p8), 0, %v551_v56 }
 0x173   : > { %v537_v48 = vld [vmem:[#allocation3] sm:$0x1] (!%p779_p8) }
 0x174   : > { %v538_v50 = vmul.f32 (!%p779_p8), 0.0078125, %v537_v48  ;;  %v539_v51 = vmul.f32 (!%p779_p8), %v536_v49, %v536_v49 }
 0x176   : > { %v540_v52 = vsub.f32 %v538_v50, %v539_v51 }
 0x178   : > { %v541_v53 = vmax.f32 %v540_v52, 0.0 }
 0x17a   : > { %v543_v54 = vadd.f32 1e-05, %v541_v53 }
 0x17c   : > { %926 = vrsqrt.f32 %v543_v54 }
 0x186   : > { %v927_v59 = vpop.eup %926 }
 0x187   : > { %v545_v60 = vmul.f32 %v927_v59, %v542_v57 }
 0x189   : > { %v547_v62 = vmul.f32 %v545_v60, %v536_v49  ;;  %v1266_v63 = vrot.slane %v545_v60, %v552_v58 }
 0x18b   : > { %v548_v0 = vsub.f32 %v546_v61, %v547_v62  ;;  %v555_v1 = vmul.f32 %v1266_v63, %v1182_v18  ;;  %v556_v2 = vmul.f32 %v1266_v63, %v1190_v22  ;;  %v557_v3 = vmul.f32 %v1178_v16, %v1266_v63 }
 0x18c   : > { %v558_v4 = vmul.f32 %v1186_v20, %v1266_v63  ;;  %v559_v5 = vmul.f32 %v1266_v63, %v1198_v26  ;;  %v560_v6 = vmul.f32 %v1266_v63, %v1206_v30  ;;  %v561_v7 = vmul.f32 %v1194_v24, %v1266_v63 }
 0x18d   : > { %v1282_v8 = vrot.slane %v548_v0, %v552_v58  ;;  %v562_v18 = vmul.f32 %v1202_v28, %v1266_v63  ;;  %v563_v16 = vmul.f32 %v1266_v63, %v1184_v19  ;;  %v564_v20 = vmul.f32 %v1266_v63, %v1192_v23 }
 0x18e   : > { %v565_v22 = vmul.f32 %v1180_v17, %v1266_v63  ;;  %v566_v26 = vmul.f32 %v1188_v21, %v1266_v63  ;;  %v567_v24 = vmul.f32 %v1266_v63, %v1200_v27  ;;  %v568_v30 = vmul.f32 %v1266_v63, %v1208_v31 }
 0x18f   : > { %v577_v28 = vadd.f32 %v1282_v8, %v555_v1  ;;  %v578_v9 = vadd.f32 %v1282_v8, %v556_v2  ;;  %v579_v19 = vadd.f32 %v1282_v8, %v557_v3  ;;  %v580_v23 = vadd.f32 %v1282_v8, %v558_v4 }
 0x190   : > { %v581_v10 = vadd.f32 %v1282_v8, %v559_v5  ;;  %v582_v17 = vadd.f32 %v1282_v8, %v560_v6  ;;  %v583_v21 = vadd.f32 %v1282_v8, %v561_v7  ;;  %v584_v11 = vadd.f32 %v1282_v8, %v562_v18 }
 0x191   : > { %vm593_vm0 = vcmp.ge.f32.partialorder %v577_v28, 0.0  ;;  %v609_v27 = vmul.f32 0.2, %v577_v28  ;;  %vm594_vm1 = vcmp.ge.f32.partialorder %v578_v9, 0.0  ;;  %v610_v31 = vmul.f32 0.2, %v578_v9 }
 0x192   : > { %vm595_vm2 = vcmp.ge.f32.partialorder %v579_v19, 0.0  ;;  %v611_v12 = vmul.f32 0.2, %v579_v19  ;;  %vm596_vm3 = vcmp.ge.f32.partialorder %v580_v23, 0.0  ;;  %v612_v13 = vmul.f32 0.2, %v580_v23 }
 0x193   : > { %v625_v14 = vsel %vm593_vm0, %v577_v28, %v609_v27  ;;  %v626_v15 = vsel %vm594_vm1, %v578_v9, %v610_v31  ;;  %vm597_vm4 = vcmp.ge.f32.partialorder %v581_v10, 0.0  ;;  %v613_v32 = vmul.f32 0.2, %v581_v10 }
 0x194   : > { %641 = vst [vmem:[#allocation9] sm:$0xff] %v625_v14  ;;  %642 = vst [vmem:[#allocation9 + $0x8] sm:$0xff] %v626_v15  ;;  %v627_v33 = vsel %vm595_vm2, %v579_v19, %v611_v12  ;;  %v628_v34 = vsel %vm596_vm3, %v580_v23, %v612_v13  ;;  %vm598_vm5 = vcmp.ge.f32.partialorder %v582_v17, 0.0  ;;  %v614_v35 = vmul.f32 0.2, %v582_v17 }
 0x195   : > { %643 = vst [vmem:[#allocation9 + $0x10] sm:$0xff] %v627_v33  ;;  %644 = vst [vmem:[#allocation9 + $0x18] sm:$0xff] %v628_v34  ;;  %v629_v36 = vsel %vm597_vm4, %v581_v10, %v613_v32  ;;  %vm599_vm6 = vcmp.ge.f32.partialorder %v583_v21, 0.0  ;;  %v615_v37 = vmul.f32 0.2, %v583_v21  ;;  %vm600_vm7 = vcmp.ge.f32.partialorder %v584_v11, 0.0 }
 0x196   : > { %645 = vst [vmem:[#allocation9 + $0x20] sm:$0xff] %v629_v36  ;;  %v630_v38 = vsel %vm598_vm5, %v582_v17, %v614_v35  ;;  %v616_v39 = vmul.f32 0.2, %v584_v11  ;;  %v585_v40 = vadd.f32 %v1282_v8, %v563_v16  ;;  %v586_v41 = vadd.f32 %v1282_v8, %v564_v20 }
 0x197   : > { %646 = vst [vmem:[#allocation9 + $0x28] sm:$0xff] %v630_v38  ;;  %v631_v42 = vsel %vm599_vm6, %v583_v21, %v615_v37  ;;  %v587_v43 = vadd.f32 %v1282_v8, %v565_v22  ;;  %v588_v44 = vadd.f32 %v1282_v8, %v566_v26  ;;  %v589_v45 = vadd.f32 %v1282_v8, %v567_v24 }
 0x198   : > { %647 = vst [vmem:[#allocation9 + $0x30] sm:$0xff] %v631_v42  ;;  %v632_v46 = vsel %vm600_vm7, %v584_v11, %v616_v39  ;;  %vm601_vm8 = vcmp.ge.f32.partialorder %v585_v40, 0.0  ;;  %v617_v47 = vmul.f32 0.2, %v585_v40  ;;  %vm602_vm9 = vcmp.ge.f32.partialorder %v586_v41, 0.0 }
 0x199   : > { %648 = vst [vmem:[#allocation9 + $0x38] sm:$0xff] %v632_v46  ;;  %v618_v48 = vmul.f32 0.2, %v586_v41  ;;  %vm603_vm10 = vcmp.ge.f32.partialorder %v587_v43, 0.0  ;;  %v619_v49 = vmul.f32 0.2, %v587_v43  ;;  %v590_v55 = vadd.f32 %v1282_v8, %v568_v30 }
 0x19a   : > { %vm604_vm11 = vcmp.ge.f32.partialorder %v588_v44, 0.0  ;;  %v633_v50 = vsel %vm601_vm8, %v585_v40, %v617_v47  ;;  %v620_v51 = vmul.f32 0.2, %v588_v44  ;;  %vm605_vm12 = vcmp.ge.f32.partialorder %v589_v45, 0.0 }
 0x19b   : > { %v621_v52 = vmul.f32 0.2, %v589_v45  ;;  %649 = vst [vmem:[#allocation9 + $0x40] sm:$0xff] %v633_v50  ;;  %v634_v53 = vsel %vm602_vm9, %v586_v41, %v618_v48  ;;  %v635_v54 = vsel %vm603_vm10, %v587_v43, %v619_v49  ;;  %v569_v56 = vmul.f32 %v1196_v25, %v1266_v63 }
 0x19c   : > { %650 = vst [vmem:[#allocation9 + $0x48] sm:$0xff] %v634_v53  ;;  %651 = vst [vmem:[#allocation9 + $0x50] sm:$0xff] %v635_v54  ;;  %v636_v57 = vsel %vm604_vm11, %v588_v44, %v620_v51  ;;  %v570_v59 = vmul.f32 %v1204_v29, %v1266_v63  ;;  %vm606_vm13 = vcmp.ge.f32.partialorder %v590_v55, 0.0  ;;  %v622_v60 = vmul.f32 0.2, %v590_v55 }
 0x19d   : > { %v637_v58 = vsel %vm605_vm12, %v589_v45, %v621_v52  ;;  %652 = vst [vmem:[#allocation9 + $0x58] sm:$0xff] %v636_v57  ;;  %v591_v61 = vadd.f32 %v1282_v8, %v569_v56 }
 0x19e   : > { %653 = vst [vmem:[#allocation9 + $0x60] sm:$0xff] %v637_v58  ;;  %v592_v62 = vadd.f32 %v1282_v8, %v570_v59  ;;  %v638_v0 = vsel %vm606_vm13, %v590_v55, %v622_v60 }
 0x19f   : > { %vm607_vm14 = vcmp.ge.f32.partialorder %v591_v61, 0.0  ;;  %v623_v1 = vmul.f32 0.2, %v591_v61  ;;  %654 = vst [vmem:[#allocation9 + $0x68] sm:$0xff] %v638_v0 }
 0x1a0   : > { %vm608_vm15 = vcmp.ge.f32.partialorder %v592_v62, 0.0  ;;  %v624_v25 = vmul.f32 0.2, %v592_v62 }
 0x1a1   : > { %v639_v2 = vsel %vm607_vm14, %v591_v61, %v623_v1 }
 0x1a2   : > { %655 = vst [vmem:[#allocation9 + $0x70] sm:$0xff] %v639_v2  ;;  %v640_v3 = vsel %vm608_vm15, %v592_v62, %v624_v25 }
 0x1a3   : > { %656 = vst [vmem:[#allocation9 + $0x78] sm:$0xff] %v640_v3 }
 0x1a4 PF: > { %p1320_p4 = scmp.eq.s32.totalorder %s754_s18, 1  ;;  %s1051_s8 = smov [#allocation9]  }
 0x1a5   : > { %s672_s9 = sshll.u32 %s1051_s8, 4  ;;  %s673_s9 = int_to_ptr.vmem [resolvable:$true] %s672_s9 }
 0x1a6   : > { %s984_s10 = scalar_lea.vmem %s673_s9, 2048  ;;  %s990_s11 = scalar_lea.vmem %s673_s9, 4096 }
 0x1a7   : > { %p985_p9 = scmp.ne.s32.totalorder %s673_s9, %s984_s10  ;;  %p991_p12 = scmp.lt.s32.totalorder %s673_s9, %s673_s9 }
 0x1a8   : > { %p992_p13 = scmp.lt.s32.totalorder %s990_s11, %s984_s10 }
 0x1a9   : > { %p986_p10 = pnand %p985_p9, %p1320_p4 }
 0x1aa   : > { %p993_p0 = por %p992_p13, %p991_p12 }
 0x1ab   : > { %p987_p11 = pneg %p986_p10 }
 0x1ad   : > { %p994_p1 = pnand %p993_p0, %p987_p11 }
 0x1af   : > { %997 = shalt.err (!%p994_p1)
}
 0x1b0   : > { %s998_s13 = scalar_lea.hbm %s1358_s4, 2048 }
 0x1b1   : > { %p999_p2 = scmp.ne.s32.totalorder %s1358_s4, %s998_s13  ;;  %p1004_p3 = scmp.lt.u32.totalorder %s998_s13, %s1358_s4 }
 0x1b3   : > { %p1000_p5 = pnand %p999_p2, %p1320_p4 }
 0x1b5   : > { %p1001_p7 = pneg %p1000_p5 }
 0x1b7   : > { %p1006_p6 = pnand %p1004_p3, %p1001_p7 }
 0x1b9   : > { %1009 = shalt.err (!%p1006_p6)
}
 0x1ba   : > { %s1052_s29 = smov 128   ;;  %s1053_s30 = smov 8  }
 0x1bb   : > { %857 = dma.vmem_to_hbm [thread:$0]  (%p1320_p4), %s673_s9, 2048, %s1358_s4, [#allocation6], %s1052_s29, %s1052_s29, %s1053_s30  }
 0x1bc PF: > { %p876_p8 = scmp.ge.s32.totalorder %s1044_s17, 2  ;;  %p877_p9 = scmp.eq.s32.totalorder %s755_s19, 1 }
 0x1be   : > { %p868_p10 = pnand %p877_p9, %p876_p8 }
 0x1c0   : > { %1031 = dma.done.wait (!%p868_p10), [#allocation6], 2048  }
 0x1c1   : > { %1033 = vsyncadd (!%p868_p10), [#allocation6], 4294965248  ;;  %s19_s17 = sadd.s32 1, %s1044_s17   ;;  %s1368_s15 = smov %s1040_s16 }
 0x1c2   : > { %p16_p11 = scmp.ge.s32.totalorder %s19_s17, 4   ;;  %s1369_s16 = smov %s1371_s20 }
 0x1c4   :  { %18 = sbr.rel (!%p16_p11) target bundleno = 5 (0x5), region = 90 }
 0x1cb   :  { %693 = vsyncpa [#allocation5], 1 }
 0x1cc   :  { %695 = vsyncpa [#allocation5 + $0x1], 1 }
 0x1cd   :  { %696 = vsyncpa [#allocation8], 1 }
 0x1ce   :  { %697 = vsyncpa [#allocation6], 1 }
 0x1cf   :  { %699 = vsyncpa [#allocation6 + $0x1], 1 }

</bundles_post_ra>
